<compile_context>
chip_gen: v7x
topology: tpu7x:2x2x1
jax: 0.10.0
libtpu: 0.0.40
codegen_flags: <defaults>
</compile_context>

<pallas_src>
from functools import partial

import jax
import jax.numpy as jnp
from jax import lax
from jax.experimental import pallas as pl
from jax.experimental.pallas import tpu as pltpu

_TILE_TARGET_BYTES = 2 << 20            # ~2 MiB of x-dtype per grid block
_MAX_COLS = 8192                        # cap on lane width of the 2-D slab
_PREFERRED_COLS = (1024, 2048, 512, 4096, 8192, 256, 128)


def _choose_cols(total):
    """Pick a lane-dense column count: a multiple of 128 that divides `total`.

    Preference: (a) a "nice" power-of-two width with rows >= 8 (full (8,128)
    vregs, unmasked vst), (b) any multiple-of-128 divisor with rows >= 8,
    (c) any multiple-of-128 divisor (tiny inputs).  Returns None if `total`
    has no multiple-of-128 divisor (caller pads the flat array once).
    """
    for c in _PREFERRED_COLS:
        if c <= total and total % c == 0 and total // c >= 8:
            return c
    hi = min(total, _MAX_COLS) // 128 * 128
    for c in range(hi, 0, -128):
        if total % c == 0 and total // c >= 8:
            return c
    for c in range(hi, 0, -128):
        if total % c == 0:
            return c
    return None


def _noise_from_bits(b1, b2, mean, std):
    """Box-Muller using BOTH outputs.

    b1, b2: int32 random words of the same shape.  Returns two independent
    float32 N(mean, std) arrays of that shape.  Kept in f32 on purpose
    (v5e has no bf16 VPU/EUP; on v6e/v7x the kernel is HBM-bound anyway).
    """
    inv_2_24 = jnp.float32(1.0 / (1 << 24))
    # Top 24 bits -> exactly representable float32 uniforms (int path, no uitofp).
    u1 = (lax.shift_right_logical(b1, jnp.int32(8)).astype(jnp.float32)
          + jnp.float32(1.0)) * inv_2_24                                         # (0, 1]
    u2 = lax.shift_right_logical(b2, jnp.int32(8)).astype(jnp.float32) * inv_2_24  # [0, 1)
    r = jnp.sqrt(jnp.float32(-2.0) * jnp.log(u1))
    theta = jnp.float32(2.0 * jnp.pi) * u2
    m = jnp.float32(mean)
    s = jnp.float32(std)
    return m + s * (r * jnp.cos(theta)), m + s * (r * jnp.sin(theta))


def _add_noise(x_ref, o_ref, bits_i32, mean, std):
    # One 32-bit word per element; the two Box-Muller branches cover the two
    # lane-halves of the tile.  Halves are loaded/stored directly (no full-tile
    # f32 copy of x), keeping live VMEM temporaries at ~half-tile size.
    h = x_ref.shape[-1] // 2
    n1, n2 = _noise_from_bits(bits_i32[:, :h], bits_i32[:, h:], mean, std)
    o_ref[:, :h] = (x_ref[:, :h].astype(jnp.float32) + n1).astype(o_ref.dtype)
    o_ref[:, h:] = (x_ref[:, h:].astype(jnp.float32) + n2).astype(o_ref.dtype)


def _gn_kernel_hw_prng(seed_ref, x_ref, o_ref, *, mean, std):
    """Noise sampled on-chip with the TPU hardware PRNG (TPU backend only)."""
    # Mix (seed, tile_id) with odd-constant multiplies + xor so adjacent seeds /
    # adjacent tiles don't land on the same or correlated hardware PRNG streams.
    pid = pl.program_id(0)
    s = seed_ref[0] * jnp.int32(0x05DEECE6) + jnp.int32(0xB)
    s = s ^ (pid * jnp.int32(0x632BE5AB) + jnp.int32(0x09E3779B))
    pltpu.prng_seed(s)
    raw = pltpu.prng_random_bits(x_ref.shape)       # one 32-bit word per element
    bits = raw if raw.dtype == jnp.int32 else pltpu.bitcast(raw, jnp.int32)
    _add_noise(x_ref, o_ref, bits, mean, std)


def _gn_kernel_host_bits(x_ref, bits_ref, o_ref, *, mean, std):
    """Portable fallback: random bits streamed in from HBM (interpret / non-TPU)."""
    _add_noise(x_ref, o_ref, bits_ref[...], mean, std)


def gaussian_noise_augmentation(x, seed, *, mean=0.0, std=1.0, training=True,
                                use_tpu_prng=None, donate_x=False):
    """JAX/Pallas equivalent of GaussianNoiseAugmentation.forward.

    Args:
      x: input array (NCHW or any shape; the op is elementwise).
      seed: integer seed for the noise.
      mean, std: noise distribution parameters (compile-time constants).
      training: mirrors nn.Module.training; eval mode (or std == 0) is identity.
      use_tpu_prng: force/disable the on-chip PRNG path; default: auto by backend.
        (Do NOT force False on TPU: the streamed-bits path adds +50-200% HBM read.)
      donate_x: alias the output onto the input buffer (only when the caller
        donates x; avoids a separate output allocation).
    """
    if (not training) or std == 0.0:
        return x
    if use_tpu_prng is None:
        use_tpu_prng = jax.default_backend() == "tpu"

    mean = float(mean)
    std = float(std)
    orig_shape = x.shape
    total = x.size
    itemsize = jnp.dtype(x.dtype).itemsize

    # ---- reshape to a lane-dense (rows, cols) slab, cols % 128 == 0 ----
    cols = _choose_cols(total)
    flat = x.reshape(-1)
    pad = 0
    if cols is None:
        # Rare: total is not a multiple of 128.  Pad the flat array once.
        # TODO(synk): handle the sub-128 tail via an OOB-padded last grid block
        # on a 1-D view instead of a full-array pad + slice (extra HBM copy).
        cols = 128 if total < 1024 else 1024
        pad = pl.cdiv(total, cols) * cols - total
        flat = jnp.pad(flat, (0, pad))
    rows = flat.size // cols
    x2d = flat.reshape(rows, cols)

    # ---- tile sizing: ~2 MiB blocks, row-count multiple of 8 ----
    if rows <= 8:
        tile_r = rows
    else:
        target_rows = max(8, (_TILE_TARGET_BYTES // (cols * itemsize)) // 8 * 8)
        tile_r = min(rows, target_rows)
    n_tiles = pl.cdiv(rows, tile_r)
    # v7x megacore: make sure the "parallel" axis has >= 2 tiles when there is
    # enough work, so both TensorCores are busy (no-op on v5e/v6e).
    if n_tiles == 1 and rows >= 16:
        tile_r = max(8, (pl.cdiv(rows, 2) + 7) // 8 * 8)
        n_tiles = pl.cdiv(rows, tile_r)

    tile_elems = tile_r * cols
    out_shape = jax.ShapeDtypeStruct((rows, cols), x.dtype)

    def _vmem_limit(extra_bytes_per_elem):
        # 2x double-buffered in + 2x double-buffered out + prng bits/intermediates.
        est = tile_elems * (4 * itemsize + 16 + extra_bytes_per_elem)
        return int(min(max(est + (4 << 20), 32 << 20), 56 << 20))

    if use_tpu_prng:
        seed_arr = jnp.asarray([seed], dtype=jnp.int32)
        # index_maps receive the scalar-prefetch ref as a trailing positional arg.
        spec = pl.BlockSpec((tile_r, cols), lambda i, seed_ref: (i, 0))
        out2d = pl.pallas_call(
            partial(_gn_kernel_hw_prng, mean=mean, std=std),
            out_shape=out_shape,
            grid_spec=pltpu.PrefetchScalarGridSpec(
                num_scalar_prefetch=1,
                grid=(n_tiles,),
                in_specs=[spec],
                out_specs=spec,
            ),
            compiler_params=pltpu.CompilerParams(
                dimension_semantics=("parallel",),   # megacore sharding on v7x
                vmem_limit_bytes=_vmem_limit(0),
            ),
            input_output_aliases=({1: 0} if donate_x else {}),
        )(seed_arr, x2d)
    else:
        key = jax.random.PRNGKey(seed)
        bits = lax.bitcast_convert_type(
            jax.random.bits(key, (rows, cols), dtype=jnp.uint32), jnp.int32)
        spec = pl.BlockSpec((tile_r, cols), lambda i: (i, 0))
        out2d = pl.pallas_call(
            partial(_gn_kernel_host_bits, mean=mean, std=std),
            out_shape=out_shape,
            grid=(n_tiles,),
            in_specs=[spec, spec],
            out_specs=spec,
            compiler_params=pltpu.CompilerParams(
                dimension_semantics=("parallel",),
                vmem_limit_bytes=_vmem_limit(8),     # + double-buffered i32 bits
            ),
            input_output_aliases=({0: 0} if donate_x else {}),
        )(x2d, bits)

    out_flat = out2d.reshape(-1)
    if pad:
        out_flat = out_flat[:total]
    return out_flat.reshape(orig_shape)


if __name__ == "__main__":
    key = jax.random.PRNGKey(0)
    # NCHW input, matching the PyTorch convention.
    x = jax.random.normal(key, (2, 4, 16, 16), dtype=jnp.float32)
    mean, std = 0.5, 2.0

    # Training mode: noise added inside the Pallas kernel.
    y = gaussian_noise_augmentation(x, seed=1234, mean=mean, std=std, training=True)
    y = jax.block_until_ready(y)

    # Eval mode: identity.
    y_eval = gaussian_noise_augmentation(x, seed=1234, mean=mean, std=std, training=False)
    y_eval = jax.block_until_ready(y_eval)

    assert y.shape == x.shape and y.dtype == x.dtype
    assert bool(jnp.all(jnp.isfinite(y)))
    assert bool(jnp.array_equal(y_eval, x))

    # Sanity check: empirical noise stats should be roughly (mean, std).
    noise = (y - x).reshape(-1)
    emp_mean = float(jnp.mean(noise))
    emp_std = float(jnp.std(noise))
    assert abs(emp_mean - mean) < 0.5, emp_mean
    assert abs(emp_std - std) < 0.6, emp_std

    print("KERNEL_OK")
</pallas_src>

<mosaic_0001>
module attributes {stable_mosaic.version = 11 : i64} {
  func.func @_gn_kernel_host_bits(%arg0: i32, %arg1: memref<8x256xf32, #tpu.memory_space<vmem>>, %arg2: memref<8x256xi32, #tpu.memory_space<vmem>>, %arg3: memref<8x256xf32, #tpu.memory_space<vmem>>) attributes {dimension_semantics = [#tpu.dimension_semantics<parallel>], iteration_bounds = array<i64: 1>, scalar_prefetch = 0 : i64, scratch_operands = 0 : i64, tpu.core_type = #tpu.core_type<tc>, window_params = [{transform_indices = @transform_0, window_bounds = array<i64: 8, 256>}, {transform_indices = @transform_1, window_bounds = array<i64: 8, 256>}, {transform_indices = @transform_2, window_bounds = array<i64: 8, 256>}]} {
    %c0 = arith.constant 0 : index
    %c0_0 = arith.constant 0 : index
    %0 = vector.load %arg2[%c0, %c0_0] : memref<8x256xi32, #tpu.memory_space<vmem>>, vector<8x256xi32>
    %1 = vector.extract_strided_slice %0 {offsets = [0, 0], sizes = [8, 128], strides = [1, 1]} : vector<8x256xi32> to vector<8x128xi32>
    %2 = vector.extract_strided_slice %0 {offsets = [0, 128], sizes = [8, 128], strides = [1, 1]} : vector<8x256xi32> to vector<8x128xi32>
    %c8_i32 = arith.constant 8 : i32
    %3 = vector.broadcast %c8_i32 : i32 to vector<8x128xi32>
    %4 = arith.shrui %1, %3 : vector<8x128xi32>
    %5 = arith.sitofp %4 : vector<8x128xi32> to vector<8x128xf32>
    %cst = arith.constant 1.000000e+00 : f32
    %6 = vector.broadcast %cst : f32 to vector<8x128xf32>
    %7 = arith.addf %5, %6 : vector<8x128xf32>
    %cst_1 = arith.constant 5.96046448E-8 : f32
    %8 = vector.broadcast %cst_1 : f32 to vector<8x128xf32>
    %9 = arith.mulf %7, %8 : vector<8x128xf32>
    %c8_i32_2 = arith.constant 8 : i32
    %10 = vector.broadcast %c8_i32_2 : i32 to vector<8x128xi32>
    %11 = arith.shrui %2, %10 : vector<8x128xi32>
    %12 = arith.sitofp %11 : vector<8x128xi32> to vector<8x128xf32>
    %cst_3 = arith.constant 5.96046448E-8 : f32
    %13 = vector.broadcast %cst_3 : f32 to vector<8x128xf32>
    %14 = arith.mulf %12, %13 : vector<8x128xf32>
    %15 = math.log %9 : vector<8x128xf32>
    %cst_4 = arith.constant -2.000000e+00 : f32
    %16 = vector.broadcast %cst_4 : f32 to vector<8x128xf32>
    %17 = arith.mulf %16, %15 : vector<8x128xf32>
    %18 = math.sqrt %17 : vector<8x128xf32>
    %cst_5 = arith.constant 6.28318548 : f32
    %19 = vector.broadcast %cst_5 : f32 to vector<8x128xf32>
    %20 = arith.mulf %19, %14 : vector<8x128xf32>
    %21 = math.cos %20 : vector<8x128xf32>
    %22 = arith.mulf %18, %21 : vector<8x128xf32>
    %cst_6 = arith.constant 2.000000e+00 : f32
    %23 = vector.broadcast %cst_6 : f32 to vector<8x128xf32>
    %24 = arith.mulf %23, %22 : vector<8x128xf32>
    %cst_7 = arith.constant 5.000000e-01 : f32
    %25 = vector.broadcast %cst_7 : f32 to vector<8x128xf32>
    %26 = arith.addf %25, %24 : vector<8x128xf32>
    %27 = math.sin %20 : vector<8x128xf32>
    %28 = arith.mulf %18, %27 : vector<8x128xf32>
    %cst_8 = arith.constant 2.000000e+00 : f32
    %29 = vector.broadcast %cst_8 : f32 to vector<8x128xf32>
    %30 = arith.mulf %29, %28 : vector<8x128xf32>
    %cst_9 = arith.constant 5.000000e-01 : f32
    %31 = vector.broadcast %cst_9 : f32 to vector<8x128xf32>
    %32 = arith.addf %31, %30 : vector<8x128xf32>
    %c0_10 = arith.constant 0 : index
    %c0_11 = arith.constant 0 : index
    %33 = vector.load %arg1[%c0_10, %c0_11] : memref<8x256xf32, #tpu.memory_space<vmem>>, vector<8x128xf32>
    %34 = arith.addf %33, %26 : vector<8x128xf32>
    %c0_12 = arith.constant 0 : index
    %c0_13 = arith.constant 0 : index
    %35 = vector.load %arg3[%c0_12, %c0_13] : memref<8x256xf32, #tpu.memory_space<vmem>>, vector<8x128xf32>
    tpu.vector_store %arg3[%c0_12, %c0_13], %34 {strides = array<i32>} : memref<8x256xf32, #tpu.memory_space<vmem>>, vector<8x128xf32>,
    %c0_14 = arith.constant 0 : index
    %c128 = arith.constant 128 : index
    %36 = vector.load %arg1[%c0_14, %c128] : memref<8x256xf32, #tpu.memory_space<vmem>>, vector<8x128xf32>
    %37 = arith.addf %36, %32 : vector<8x128xf32>
    %c0_15 = arith.constant 0 : index
    %c128_16 = arith.constant 128 : index
    %38 = vector.load %arg3[%c0_15, %c128_16] : memref<8x256xf32, #tpu.memory_space<vmem>>, vector<8x128xf32>
    tpu.vector_store %arg3[%c0_15, %c128_16], %37 {strides = array<i32>} : memref<8x256xf32, #tpu.memory_space<vmem>>, vector<8x128xf32>,
    return
  }
  func.func @transform_0(%arg0: i32) -> (i32, i32) {
    %c0_i32 = arith.constant 0 : i32
    %c0_i32_0 = arith.constant 0 : i32
    return %arg0, %c0_i32 : i32, i32
  }
  func.func @transform_1(%arg0: i32) -> (i32, i32) {
    %c0_i32 = arith.constant 0 : i32
    %c0_i32_0 = arith.constant 0 : i32
    return %arg0, %c0_i32 : i32, i32
  }
  func.func @transform_2(%arg0: i32) -> (i32, i32) {
    %c0_i32 = arith.constant 0 : i32
    %c0_i32_0 = arith.constant 0 : i32
    return %arg0, %c0_i32 : i32, i32
  }
}

</mosaic_0001>

<bundles_post_ra>
// kernel: tpu_custom_call.1
= control target key start
LH: loop header
LB: loop body
LE: loop exit
PB: predicated region body
PF: predicated region fallthrough
CT: control target
= control target key end

     0   :  { %7 = vsyncpa [#allocation3], 0  ;;  %s476_s0 = inlined_call_operand.hbm [shape: f32[8,256], index: 0, kind: input, shape index: {}]   ;;  %s477_s1 = inlined_call_operand.hbm [shape: s32[8,256], index: 1, kind: input, shape index: {}]   ;;  %s478_s2 = inlined_call_operand.hbm [shape: f32[8,256], index: 2, kind: output, shape index: {}]  }
   0x1   :  { %8 = vsyncpa [#allocation6], 0 }
   0x2   :  { %9 = vsyncpa [#allocation4], 0  ;;  %s392_s9 = smov [#allocation2]   ;;  %s393_s11 = smov [#allocation5]  }
   0x3   :  { %s16_s10 = sshll.u32 %s392_s9, 4  ;;  %s26_s12 = sshll.u32 %s393_s11, 4  ;;  %s17_s10 = int_to_ptr.vmem [resolvable:$true] %s16_s10  ;;  %s27_s12 = int_to_ptr.vmem [resolvable:$true] %s26_s12 }
   0x4   :  { %s320_s15 = scalar_lea.hbm %s476_s0, 256 }
   0x5   :  { %p321_p0 = scmp.ne.s32.totalorder %s476_s0, %s320_s15  ;;  %p324_p1 = scmp.lt.u32.totalorder %s320_s15, %s476_s0 }
   0x7   :  { %p326_p2 = pnand %p324_p1, %p321_p0 }
   0x9   :  { %329 = shalt.err (!%p326_p2)
}
   0xa   :  { %s330_s20 = scalar_lea.vmem %s17_s10, 256  ;;  %p335_p4 = scmp.lt.s32.totalorder %s17_s10, %s17_s10 }
   0xb   :  { %p331_p3 = scmp.ne.s32.totalorder %s17_s10, %s330_s20  ;;  %p336_p5 = scmp.lt.s32.totalorder %s330_s20, %s330_s20 }
   0xd   :  { %p337_p6 = por %p336_p5, %p335_p4 }
   0xf   :  { %p338_p7 = pnand %p337_p6, %p331_p3 }
  0x11   :  { %341 = shalt.err (!%p338_p7)
}
  0x12   :  { %19 = dma.hbm_to_vmem [thread:$0]  %s476_s0, 256, %s17_s10, [#allocation3]  }
  0x13   :  { %s342_s25 = scalar_lea.hbm %s477_s1, 256 }
  0x14   :  { %p343_p8 = scmp.ne.s32.totalorder %s477_s1, %s342_s25  ;;  %p346_p9 = scmp.lt.u32.totalorder %s342_s25, %s477_s1 }
  0x16   :  { %p348_p10 = pnand %p346_p9, %p343_p8 }
  0x18   :  { %351 = shalt.err (!%p348_p10)
}
  0x19   :  { %s352_s30 = scalar_lea.vmem %s27_s12, 256  ;;  %p357_p12 = scmp.lt.s32.totalorder %s27_s12, %s27_s12 }
  0x1a   :  { %p353_p11 = scmp.ne.s32.totalorder %s27_s12, %s352_s30  ;;  %p358_p13 = scmp.lt.s32.totalorder %s352_s30, %s352_s30 }
  0x1c   :  { %p359_p0 = por %p358_p13, %p357_p12 }
  0x1e   :  { %p360_p1 = pnand %p359_p0, %p353_p11 }
  0x20   :  { %363 = shalt.err (!%p360_p1)
}
  0x21   :  { %29 = dma.hbm_to_vmem [thread:$0]  %s477_s1, 256, %s27_s12, [#allocation6]  }
  0x22   :  { %386 = dma.done.wait [#allocation3], 256  }
  0x23   :  { %387 = vsyncadd [#allocation3], 4294967040 }
  0x24   :  { %388 = dma.done.wait [#allocation6], 256  }
  0x25   :  { %389 = vsyncadd [#allocation6], 4294967040  ;;  %v37_v0 = vld [vmem:[#allocation5 + $0x8] sm:$0xff]  ;;  %v394_v15 = vmov 683565275   ;;  %v36_v38 = vld [vmem:[#allocation5] sm:$0xff] }
  0x26   :  { %v42_v1 = vshrl.u32 %v37_v0, 8  ;;  %v395_v17 = vmov 2475754826   ;;  %v396_v19 = vmov 2131351028   ;;  %v38_v48 = vshrl.u32 %v36_v38, 8 }
  0x27   :  { %v397_v23 = vmov 2102212464   ;;  %v398_v28 = vmov 920167782   ;;  %v399_v34 = vmov 1326507024  }
  0x28   :  { %v43_v2 = vcvt.s32.f32 %v42_v1  ;;  %v39_v58 = vcvt.s32.f32 %v38_v48  ;;  %s400_s1 = smov [#allocation7]  }
  0x29   :  { %s281_s4 = sshll.u32 %s400_s1, 4  ;;  %s282_s4 = int_to_ptr.vmem [resolvable:$true] %s281_s4 }
  0x2a   :  { %v44_v3 = vmul.f32 5.9604645e-08, %v43_v2  ;;  %v40_v62 = vadd.f32 1.0, %v39_v58  ;;  %s364_s5 = scalar_lea.vmem %s282_s4, 256  ;;  %p369_p3 = scmp.lt.s32.totalorder %s282_s4, %s282_s4 }
  0x2b   :  { %p365_p2 = scmp.ne.s32.totalorder %s282_s4, %s364_s5  ;;  %p370_p4 = scmp.lt.s32.totalorder %s364_s5, %s364_s5 }
  0x2c   :  { %v440_v4 = vmul.f32 6.2831855, %v44_v3  ;;  %v41_v1 = vmul.f32 5.9604645e-08, %v40_v62 }
  0x2d   :  { %p371_p5 = por %p370_p4, %p369_p3 }
  0x2e   :  { %v59_v5 = vand.u32 2139095040, %v440_v4  ;;  %v56_v9 = vand.u32 2147483647, %v440_v4  ;;  %312 = vlog2.f32 %v41_v1  ;;  %vm58_vm7 = vcmp.lt.s32.totalorder %v440_v4, 0 }
  0x2f   :  { %p372_p6 = pnand %p371_p5, %p365_p2 }
  0x30   :  { %v60_v6 = vshrl.u32 %v59_v5, 23  ;;  %v63_v12 = vand.u32 8388607, %v56_v9  ;;  %vm57_vm8 = vcmp.le.f32.partialorder %v56_v9, 0.7853982 }
  0x32   :  { %v291_v7 = vadd.s32 4294967169, %v60_v6  ;;  %v64_v26 = vor.u32 8388608, %v63_v12 }
  0x34   :  { %v66_v8 = vadd.s32 1, %v291_v7  ;;  %v104_v41 = vshll.u32 %v64_v26, 8 }
  0x36   :  { %vm67_vm0 = vcmp.gt.s32.totalorder %v66_v8, 0 }
  0x37   :  { %v68_v10 = vsel %vm67_vm0, %v66_v8, 0 }
  0x38   :  { %v70_v11 = vand.u32 31, %v68_v10  ;;  %v69_v13 = vshrl.u32 %v68_v10, 5 }
  0x3a   :  { %v71_v14 = vsub.s32 32, %v70_v11  ;;  %v73_v16 = vshll.u32 %v394_v15, %v70_v11  ;;  %v76_v18 = vshll.u32 %v395_v17, %v70_v11  ;;  %v79_v20 = vshll.u32 %v396_v19, %v70_v11 }
  0x3b   :  { %v82_v25 = vshll.u32 %v397_v23, %v70_v11  ;;  %v85_v29 = vshll.u32 %v398_v28, %v70_v11  ;;  %vm88_vm1 = vcmp.lt.s32.totalorder %v69_v13, 1  ;;  %vm91_vm2 = vcmp.lt.s32.totalorder %v69_v13, 4  ;;  %v313_v11 = vpop.eup %312 }
  0x3c   :  { %v74_v21 = vshrl.u32 %v395_v17, %v71_v14  ;;  %v77_v22 = vshrl.u32 %v396_v19, %v71_v14  ;;  %v80_v24 = vshrl.u32 %v397_v23, %v71_v14  ;;  %v72_v27 = vshrl.u32 %v394_v15, %v71_v14 }
  0x3d   :  { %v83_v33 = vshrl.u32 %v398_v28, %v71_v14  ;;  %v86_v35 = vshrl.u32 %v399_v34, %v71_v14  ;;  %vm90_vm3 = vcmp.lt.s32.totalorder %v69_v13, 3  ;;  %vm89_vm4 = vcmp.lt.s32.totalorder %v69_v13, 2 }
  0x3e   :  { %v75_v30 = vor.u32 %v74_v21, %v73_v16  ;;  %v78_v31 = vor.u32 %v77_v22, %v76_v18  ;;  %v81_v32 = vor.u32 %v80_v24, %v79_v20  ;;  %v46_v16 = vmul.f32 0.6931472, %v313_v11 }
  0x3f   :  { %v84_v36 = vor.u32 %v83_v33, %v82_v25  ;;  %v87_v39 = vor.u32 %v86_v35, %v85_v29 }
  0x40   :  { %v93_v37 = vsel %vm91_vm2, %v81_v32, 2102212464  ;;  %v96_v40 = vsel %vm88_vm1, %v75_v30, %v78_v31  ;;  %v92_v42 = vsel %vm88_vm1, %v72_v27, %v75_v30  ;;  %v100_v45 = vsel %vm88_vm1, %v78_v31, %v81_v32 }
  0x41   :  { %v94_v43 = vsel %vm90_vm3, %v78_v31, %v93_v37  ;;  %v97_v44 = vsel %vm91_vm2, %v84_v36, 920167782  ;;  %v101_v47 = vsel %vm91_vm2, %v87_v39, 1326507024  ;;  %v47_v21 = vmul.f32 -2.0, %v46_v16 }
  0x42   :  { %v98_v46 = vsel %vm90_vm3, %v81_v32, %v97_v44  ;;  %v102_v50 = vsel %vm90_vm3, %v84_v36, %v101_v47  ;;  %v95_v51 = vsel %vm89_vm4, %v92_v42, %v94_v43  ;;  %vm148_vm1 = vweird.f32 %v440_v4 }
  0x43   :  { %v99_v49 = vsel %vm89_vm4, %v96_v40, %v98_v46  ;;  %v103_v52 = vsel %vm89_vm4, %v100_v45, %v102_v50  ;;  %v111_v57 = vmul.u32 %v104_v41, %v95_v51  ;;  %314 = vrsqrt.f32 %v47_v21 }
  0x44   :  { %v449_v53 = vmul.u32.u64.low %v104_v41, %v99_v49  ;;  %v450_v54 = vmul.u32.u64.high %v104_v41, %v99_v49, %v449_v53  ;;  %v452_v55 = vmul.u32.u64.low %v104_v41, %v103_v52  ;;  %v453_v56 = vmul.u32.u64.high %v104_v41, %v103_v52, %v452_v55 }
  0x45   :  { %vm50_vm9 = vcmp.eq.f32.partialorder %v47_v21, inf  ;;  %vm52_vm10 = vcmp.eq.f32.partialorder %v47_v21, 0.0  ;;  %v53_v38 = vand.u32 2147483648, %v47_v21  ;;  %v269_v55 = vld [vmem:[#allocation2] sm:$0xff] }
  0x46   :  { %v114_v59 = vadd.s32 1, %v450_v54  ;;  %vm113_vm5 = vc.u32 %v453_v56, %v449_v53  ;;  %v112_v10 = vadd.s32 %v449_v53, %v453_v56  ;;  %v272_v56 = vld [vmem:[#allocation2 + $0x8] sm:$0xff] }
  0x48   :  { %v115_v60 = vsel %vm113_vm5, %v114_v59, %v450_v54 }
  0x49   :  { %v116_v61 = vadd.s32 %v115_v60, %v111_v57 }
  0x4b   :  { %v117_v63 = vadd.s32 536870912, %v116_v61 }
  0x4d   :  { %v118_v0 = vshrl.u32 %v117_v63, 30  ;;  %v315_v33 = vpop.eup %314 }
  0x4e   :  { %v49_v36 = vmul.f32 %v315_v33, %v47_v21 }
  0x4f   :  { %v119_v2 = vshll.u32 %v118_v0, 30  ;;  %v142_v25 = vsub.s32 4, %v118_v0 }
  0x50   :  { %v51_v39 = vsel %vm50_vm9, %v47_v21, %v49_v36 }
  0x51   :  { %v120_v3 = vsub.s32 %v116_v61, %v119_v2  ;;  %v143_v28 = vsel %vm58_vm7, %v142_v25, %v118_v0  ;;  %v54_v44 = vsel %vm52_vm10, %v53_v38, %v51_v39 }
  0x52   :  { %v145_v31 = vsel %vm57_vm8, 0, %v143_v28 }
  0x53   :  { %v122_v5 = vsub.s32 0, %v120_v3  ;;  %v255_v32 = vadd.s32 3, %v145_v31  ;;  %v149_v34 = vand.u32 3, %v145_v31 }
  0x55   :  { %v292_v6 = vmin.u32 %v122_v5, %v120_v3  ;;  %v256_v35 = vand.u32 3, %v255_v32  ;;  %vm154_vm11 = vcmp.eq.s32.totalorder %v149_v34, 2  ;;  %vm151_vm13 = vcmp.eq.s32.totalorder %v149_v34, 0 }
  0x56   :  { %vm150_vm15 = vcmp.lt.s32.totalorder %v149_v34, 2 }
  0x57   :  { %v124_v7 = vclz %v292_v6  ;;  %vm261_vm12 = vcmp.eq.s32.totalorder %v256_v35, 2  ;;  %vm258_vm14 = vcmp.eq.s32.totalorder %v256_v35, 0  ;;  %vm257_vm0 = vcmp.lt.s32.totalorder %v256_v35, 2 }
  0x59   :  { %v293_v8 = vadd.s32 4294967294, %v124_v7 }
  0x5b   :  { %vm294_vm6 = vcmp.lt.s32.totalorder %v293_v8, 0 }
  0x5c   :  { %v127_v12 = vsel %vm294_vm6, 0, %v293_v8 }
  0x5d   :  { %v128_v13 = vsub.s32 32, %v127_v12  ;;  %v129_v14 = vshll.u32 %v120_v3, %v127_v12  ;;  %v132_v15 = vsub.s32 4294967266, %v127_v12 }
  0x5f   :  { %v130_v17 = vshrl.u32 %v112_v10, %v128_v13  ;;  %v133_v18 = vadd.s32 127, %v132_v15 }
  0x61   :  { %v131_v19 = vor.u32 %v130_v17, %v129_v14  ;;  %v134_v20 = vshll.u32 %v133_v18, 23 }
  0x63   :  { %v135_v22 = vor.u32 4788187, %v134_v20  ;;  %v138_v23 = vcvt.s32.f32 %v131_v19 }
  0x65   :  { %v136_v24 = vand.u32 2147483647, %v135_v22 }
  0x67   :  { %v139_v26 = vmul.f32 %v138_v23, %v136_v24 }
  0x69   :  { %v140_v27 = vxor.u32 2147483648, %v139_v26 }
  0x6b   :  { %v141_v29 = vsel %vm58_vm7, %v140_v27, %v139_v26 }
  0x6c   :  { %v144_v30 = vsel %vm57_vm8, %v440_v4, %v141_v29 }
  0x6d   :  { %316 = vcosq.f32 %v144_v30 }
  0x6e   :  { %318 = vsinq.f32 %v144_v30 }
  0x77   :  { %v317_v37 = vpop.eup %316 }
  0x78   :  { %v319_v9 = vpop.eup %318  ;;  %v155_v40 = vxor.u32 2147483648, %v317_v37 }
  0x79   :  { %v152_v41 = vxor.u32 2147483648, %v319_v9 }
  0x7a   :  { %v156_v42 = vsel %vm154_vm11, %v155_v40, %v319_v9  ;;  %v263_v43 = vsel %vm261_vm12, %v155_v40, %v319_v9 }
  0x7b   :  { %v153_v45 = vsel %vm151_vm13, %v317_v37, %v152_v41  ;;  %v260_v46 = vsel %vm258_vm14, %v317_v37, %v152_v41 }
  0x7c   :  { %v157_v47 = vsel %vm150_vm15, %v153_v45, %v156_v42  ;;  %v264_v48 = vsel %vm257_vm0, %v260_v46, %v263_v43 }
  0x7d   :  { %v158_v49 = vsel %vm148_vm1, nan, %v157_v47  ;;  %v265_v50 = vsel %vm148_vm1, nan, %v264_v48 }
  0x7e   :  { %v159_v51 = vmul.f32 %v158_v49, %v54_v44  ;;  %v266_v52 = vmul.f32 %v265_v50, %v54_v44 }
  0x80   :  { %v160_v53 = vmul.f32 2.0, %v159_v51  ;;  %v267_v54 = vmul.f32 2.0, %v266_v52 }
  0x82   :  { %v161_v57 = vadd.f32 0.5, %v160_v53  ;;  %v268_v58 = vadd.f32 0.5, %v267_v54 }
  0x84   :  { %v270_v4 = vadd.f32 %v269_v55, %v161_v57  ;;  %v273_v59 = vadd.f32 %v272_v56, %v268_v58 }
  0x86   :  { %271 = vst [vmem:[#allocation7] sm:$0xff] %v270_v4  ;;  %274 = vst [vmem:[#allocation7 + $0x8] sm:$0xff] %v273_v59 }
  0x87   :  { %375 = shalt.err (!%p372_p6)
}
  0x88   :  { %s376_s8 = scalar_lea.hbm %s478_s2, 256 }
  0x89   :  { %p377_p7 = scmp.ne.s32.totalorder %s478_s2, %s376_s8  ;;  %p380_p8 = scmp.lt.u32.totalorder %s376_s8, %s478_s2 }
  0x8b   :  { %p382_p9 = pnand %p380_p8, %p377_p7 }
  0x8d   :  { %385 = shalt.err (!%p382_p9)
}
  0x8e   :  { %284 = dma.vmem_to_hbm [thread:$0]  %s282_s4, 256, %s478_s2, [#allocation4]  }
  0x8f   :  { %390 = dma.done.wait [#allocation4], 256  }
  0x90   :  { %391 = vsyncadd [#allocation4], 4294967040 }
  0x91   :  { %288 = vsyncpa [#allocation3], 1 }
  0x92   :  { %289 = vsyncpa [#allocation6], 1 }
  0x93   :  { %290 = vsyncpa [#allocation4], 1 }

</bundles_post_ra>
